<compile_context>
chip_gen: v7x
topology: tpu7x:2x2x1
jax: 0.10.0
libtpu: 0.0.40
codegen_flags: <defaults>
</compile_context>

<pallas_src>
import jax
import jax.numpy as jnp
from jax import lax
from jax.experimental import pallas as pl
from jax.experimental.pallas import tpu as pltpu

NSTEPS = 4   # fixed RK4 substeps for the ODE branch


def _choose_tile(n_rows):
    # Largest sublane-aligned batch tile <= 128 that is not larger than needed.
    for t in (128, 64, 32, 16, 8):
        if n_rows >= t:
            return t
    return 8


def _pad_rows(x, tile):
    pad = (-x.shape[0]) % tile
    return jnp.pad(x, ((0, pad), (0, 0))) if pad else x


# ----------------------------------------------------------------------------
# Kernel 1: GRU cell (update branch) — 2 fused bf16 matmuls + f32 gate math
# ----------------------------------------------------------------------------
def _gru_cell_kernel(x_ref, h_ref, wih_ref, whh_ref, bih_ref, bhh_ref, out_ref):
    H = out_ref.shape[1]
    x = x_ref[...]                                     # (TB, I)  bf16
    h = h_ref[...]                                     # (TB, H)  f32

    # gi = x @ W_ih, gh = h @ W_hh, both (TB, 3H); bf16 operands, f32 accumulate.
    gi = jnp.dot(x, wih_ref[...], preferred_element_type=jnp.float32) + bih_ref[...]
    gh = jnp.dot(h.astype(jnp.bfloat16), whh_ref[...],
                 preferred_element_type=jnp.float32) + bhh_ref[...]

    # Lane slices of the 3H-wide results are tile-aligned (free) when H % 128 == 0.
    r = jax.nn.sigmoid(gi[:, 0:H] + gh[:, 0:H])
    z = jax.nn.sigmoid(gi[:, H:2 * H] + gh[:, H:2 * H])
    n = jnp.tanh(gi[:, 2 * H:3 * H] + r * gh[:, 2 * H:3 * H])
    out_ref[...] = n + z * (h - n)                     # == (1-z)*n + z*h  (f32)


def gru_cell(x_obs, h_obs, w_ih, w_hh, b_ih, b_hh):
    n_obs, in_dim = x_obs.shape
    hidden = h_obs.shape[1]

    tb = _choose_tile(n_obs)
    x_p = _pad_rows(x_obs, tb)
    h_p = _pad_rows(h_obs, tb)
    n_rows = x_p.shape[0]

    def const2(shape):
        return pl.BlockSpec(shape, lambda i: (0, 0))   # resident across the grid

    flops = int(2 * n_rows * (in_dim + hidden) * 3 * hidden)
    bytes_accessed = int(w_ih.size * 2 + w_hh.size * 2
                         + (b_ih.size + b_hh.size) * 4
                         + n_rows * in_dim * 2 + 2 * n_rows * hidden * 4)

    out = pl.pallas_call(
        _gru_cell_kernel,
        out_shape=jax.ShapeDtypeStruct((n_rows, hidden), jnp.float32),
        grid=(n_rows // tb,),
        in_specs=[
            pl.BlockSpec((tb, in_dim), lambda i: (i, 0)),
            pl.BlockSpec((tb, hidden), lambda i: (i, 0)),
            const2((in_dim, 3 * hidden)),
            const2((hidden, 3 * hidden)),
            const2((1, 3 * hidden)),
            const2((1, 3 * hidden)),
        ],
        out_specs=pl.BlockSpec((tb, hidden), lambda i: (i, 0)),
        compiler_params=pltpu.CompilerParams(dimension_semantics=("parallel",)),
        cost_estimate=pl.CostEstimate(flops=flops,
                                      transcendentals=int(3 * n_rows * hidden),
                                      bytes_accessed=bytes_accessed),
    )(x_p.astype(jnp.bfloat16), h_p, w_ih, w_hh, b_ih, b_hh)
    return out[:n_obs]


# ----------------------------------------------------------------------------
# Kernel 2: fixed-step RK4 integration of the ODENetTS surrogate vector field
# ----------------------------------------------------------------------------
def _ode_rk4_kernel(t_ref, h_ref, w1_ref, b1_ref, w2_ref, b2_ref, out_ref):
    # t_ref (SMEM): [current_time, delta_t]; current_time unused (time-invariant field).
    # Hoist invariant weight/bias loads out of the RK4 loop.
    w1 = w1_ref[...]                                   # (H, H) bf16
    w2 = w2_ref[...]                                   # (H, H) bf16
    b1 = b1_ref[...]                                   # (1, H) f32
    b2 = b2_ref[...]                                   # (1, H) f32

    def f(h):
        z = jnp.tanh(jnp.dot(h.astype(jnp.bfloat16), w1,
                             preferred_element_type=jnp.float32) + b1)
        return jnp.dot(z.astype(jnp.bfloat16), w2,
                       preferred_element_type=jnp.float32) + b2

    dt = t_ref[1] * (1.0 / NSTEPS)
    half_dt = 0.5 * dt
    dt6 = dt * (1.0 / 6.0)

    def step(_, h):
        k1 = f(h)
        k2 = f(h + half_dt * k1)
        k3 = f(h + half_dt * k2)
        k4 = f(h + dt * k3)
        return h + dt6 * (k1 + 2.0 * k2 + 2.0 * k3 + k4)

    out_ref[...] = lax.fori_loop(0, NSTEPS, step, h_ref[...], unroll=True)


def ode_evolve(current_time, delta_t, mgn_h, w1, b1, w2, b2):
    batch, hidden = mgn_h.shape
    tb = _choose_tile(batch)
    h_p = _pad_rows(mgn_h, tb)
    n_rows = h_p.shape[0]

    t_vec = jnp.stack([jnp.asarray(current_time, jnp.float32),
                       jnp.asarray(delta_t, jnp.float32)])

    def const2(shape):
        return pl.BlockSpec(shape, lambda i: (0, 0))   # resident across the grid

    flops = int(2 * 2 * 4 * NSTEPS * n_rows * hidden * hidden)
    bytes_accessed = int((w1.size + w2.size) * 2 + (b1.size + b2.size) * 4
                         + 2 * n_rows * hidden * 4 + 8)

    out = pl.pallas_call(
        _ode_rk4_kernel,
        out_shape=jax.ShapeDtypeStruct((n_rows, hidden), jnp.float32),
        grid=(n_rows // tb,),
        in_specs=[
            pl.BlockSpec(memory_space=pltpu.MemorySpace.SMEM),
            pl.BlockSpec((tb, hidden), lambda i: (i, 0)),
            const2((hidden, hidden)),
            const2((1, hidden)),
            const2((hidden, hidden)),
            const2((1, hidden)),
        ],
        out_specs=pl.BlockSpec((tb, hidden), lambda i: (i, 0)),
        compiler_params=pltpu.CompilerParams(dimension_semantics=("parallel",)),
        cost_estimate=pl.CostEstimate(flops=flops,
                                      transcendentals=int(4 * NSTEPS * n_rows * hidden),
                                      bytes_accessed=bytes_accessed),
    )(t_vec, h_p, w1, b1, w2, b2)
    return out[:batch]


# ----------------------------------------------------------------------------
# Pure-JAX references (correctness checks only)
# ----------------------------------------------------------------------------
def _gru_ref(x, h, w_ih, w_hh, b_ih, b_hh):
    H = h.shape[1]
    gi = jnp.dot(x.astype(jnp.bfloat16), w_ih, preferred_element_type=jnp.float32) + b_ih
    gh = jnp.dot(h.astype(jnp.bfloat16), w_hh, preferred_element_type=jnp.float32) + b_hh
    r = jax.nn.sigmoid(gi[:, :H] + gh[:, :H])
    z = jax.nn.sigmoid(gi[:, H:2 * H] + gh[:, H:2 * H])
    n = jnp.tanh(gi[:, 2 * H:] + r * gh[:, 2 * H:])
    return (1.0 - z) * n + z * h


def _ode_ref(delta_t, h, w1, b1, w2, b2):
    def f(h):
        z = jnp.tanh(jnp.dot(h.astype(jnp.bfloat16), w1,
                             preferred_element_type=jnp.float32) + b1)
        return jnp.dot(z.astype(jnp.bfloat16), w2,
                       preferred_element_type=jnp.float32) + b2
    dt = delta_t / NSTEPS
    for _ in range(NSTEPS):
        k1 = f(h); k2 = f(h + 0.5 * dt * k1)
        k3 = f(h + 0.5 * dt * k2); k4 = f(h + dt * k3)
        h = h + (dt / 6.0) * (k1 + 2.0 * k2 + 2.0 * k3 + k4)
    return h


# ----------------------------------------------------------------------------
# Module wrapper (parameter setup + gather/scatter glue in plain JAX)
# ----------------------------------------------------------------------------
class MgnODERNN:
    def __init__(self, input_dim, memory_dim, key):
        self.input_size = input_dim
        self.n_dim = memory_dim
        self.hidden_size = input_dim * memory_dim
        H, I = self.hidden_size, self.input_size

        ks = jax.random.split(key, 8)
        k = 1.0 / jnp.sqrt(jnp.float32(H))  # PyTorch GRUCell init range
        u = lambda kk, shape: jax.random.uniform(kk, shape, jnp.float32, -k, k)

        # GRU params, pre-transposed and gate-stacked along lanes [r | z | n];
        # matmul operands in bf16, biases / elementwise math in f32.
        self.w_ih = u(ks[0], (I, 3 * H)).astype(jnp.bfloat16)
        self.w_hh = u(ks[1], (H, 3 * H)).astype(jnp.bfloat16)
        self.b_ih = u(ks[2], (1, 3 * H))
        self.b_hh = u(ks[3], (1, 3 * H))

        # ODENetTS surrogate: 2-layer tanh MLP on the hidden state.
        self.w1 = u(ks[4], (H, H)).astype(jnp.bfloat16)
        self.b1 = u(ks[5], (1, H))
        self.w2 = u(ks[6], (H, H)).astype(jnp.bfloat16)
        self.b2 = u(ks[7], (1, H))

    def forward(self, current_time, mgn_h, delta_t,
                X_obs=None, M_obs=None, i_obs=None, update=False):
        if update:
            h_obs = mgn_h[i_obs]                                   # gather (glue)
            h_new = gru_cell(X_obs, h_obs,
                             self.w_ih, self.w_hh, self.b_ih, self.b_hh)
            return mgn_h.at[i_obs].set(h_new)                      # scatter (glue)
        else:
            return ode_evolve(current_time, delta_t, mgn_h,
                              self.w1, self.b1, self.w2, self.b2)


if __name__ == "__main__":
    key = jax.random.PRNGKey(0)
    k_mod, k_h, k_x = jax.random.split(key, 3)

    input_dim, memory_dim, batch = 8, 16, 16
    hidden = input_dim * memory_dim  # 128 -> lane-dense hidden state

    model = MgnODERNN(input_dim, memory_dim, k_mod)

    mgn_h = jax.random.normal(k_h, (batch, hidden), jnp.float32)
    i_obs = jnp.array([0, 2, 5, 7, 9, 12], dtype=jnp.int32)        # 6 rows (pads to 8)
    X_obs = jax.random.normal(k_x, (i_obs.shape[0], input_dim), jnp.float32)

    # Branch 1: GRU update on observed rows.
    h_updated = model.forward(0.0, mgn_h, 0.0,
                              X_obs=X_obs, i_obs=i_obs, update=True)
    h_updated = jax.block_until_ready(h_updated)

    # Branch 2: ODE evolution of the full hidden state.
    h_evolved = model.forward(0.5, h_updated, 0.1, update=False)
    h_evolved = jax.block_until_ready(h_evolved)

    assert h_updated.shape == (batch, hidden)
    assert h_evolved.shape == (batch, hidden)
    assert bool(jnp.all(jnp.isfinite(h_updated)))
    assert bool(jnp.all(jnp.isfinite(h_evolved)))

    # Unobserved rows must be untouched by the update branch.
    mask = jnp.ones((batch,), bool).at[i_obs].set(False)
    assert bool(jnp.all(h_updated[mask] == mgn_h[mask]))

    # Numerical checks against pure-JAX references (bf16 matmul tolerance).
    gru_ref = _gru_ref(X_obs, mgn_h[i_obs],
                       model.w_ih, model.w_hh, model.b_ih, model.b_hh)
    assert bool(jnp.allclose(h_updated[i_obs], gru_ref, atol=3e-2, rtol=3e-2))

    ode_ref = _ode_ref(0.1, h_updated, model.w1, model.b1, model.w2, model.b2)
    assert bool(jnp.allclose(h_evolved, ode_ref, atol=5e-2, rtol=5e-2))

    print("KERNEL_OK")
</pallas_src>

<mosaic_0001>
module attributes {stable_mosaic.version = 11 : i64} {
  func.func @_gru_cell_kernel(%arg0: i32, %arg1: memref<8x8xbf16, #tpu.memory_space<vmem>>, %arg2: memref<8x128xf32, #tpu.memory_space<vmem>>, %arg3: memref<8x384xbf16, #tpu.memory_space<vmem>>, %arg4: memref<128x384xbf16, #tpu.memory_space<vmem>>, %arg5: memref<1x384xf32, #tpu.memory_space<vmem>>, %arg6: memref<1x384xf32, #tpu.memory_space<vmem>>, %arg7: memref<8x128xf32, #tpu.memory_space<vmem>>) attributes {dimension_semantics = [#tpu.dimension_semantics<parallel>], iteration_bounds = array<i64: 1>, scalar_prefetch = 0 : i64, scratch_operands = 0 : i64, tpu.core_type = #tpu.core_type<tc>, window_params = [{transform_indices = @transform_0, window_bounds = array<i64: 8, 8>}, {transform_indices = @transform_1, window_bounds = array<i64: 8, 128>}, {pipeline_mode = #tpu.pipeline_mode<synchronous>, transform_indices = @transform_2, window_bounds = array<i64: 8, 384>}, {pipeline_mode = #tpu.pipeline_mode<synchronous>, transform_indices = @transform_3, window_bounds = array<i64: 128, 384>}, {pipeline_mode = #tpu.pipeline_mode<synchronous>, transform_indices = @transform_4, window_bounds = array<i64: 1, 384>}, {pipeline_mode = #tpu.pipeline_mode<synchronous>, transform_indices = @transform_5, window_bounds = array<i64: 1, 384>}, {transform_indices = @transform_6, window_bounds = array<i64: 8, 128>}]} {
    %c0 = arith.constant 0 : index
    %c0_0 = arith.constant 0 : index
    %0 = vector.load %arg1[%c0, %c0_0] : memref<8x8xbf16, #tpu.memory_space<vmem>>, vector<8x8xbf16>
    %c0_1 = arith.constant 0 : index
    %c0_2 = arith.constant 0 : index
    %1 = vector.load %arg2[%c0_1, %c0_2] : memref<8x128xf32, #tpu.memory_space<vmem>>, vector<8x128xf32>
    %c0_3 = arith.constant 0 : index
    %c0_4 = arith.constant 0 : index
    %2 = vector.load %arg3[%c0_3, %c0_4] : memref<8x384xbf16, #tpu.memory_space<vmem>>, vector<8x384xbf16>
    %cst = arith.constant dense<0.000000e+00> : vector<8x384xf32>
    %3 = tpu.matmul %0, %2, %cst {dimension_numbers = #tpu.dot_dimension_numbers<[1], [0], [0], [1], [0, 0, 1, 1], [], []>} : vector<8x8xbf16>, vector<8x384xbf16>, vector<8x384xf32> -> vector<8x384xf32>
    %c0_5 = arith.constant 0 : index
    %c0_6 = arith.constant 0 : index
    %4 = vector.load %arg5[%c0_5, %c0_6] : memref<1x384xf32, #tpu.memory_space<vmem>>, vector<1x384xf32>
    %5 = vector.broadcast %4 : vector<1x384xf32> to vector<8x384xf32>
    %6 = arith.addf %3, %5 : vector<8x384xf32>
    %7 = arith.truncf %1 : vector<8x128xf32> to vector<8x128xbf16>
    %c0_7 = arith.constant 0 : index
    %c0_8 = arith.constant 0 : index
    %8 = vector.load %arg4[%c0_7, %c0_8] : memref<128x384xbf16, #tpu.memory_space<vmem>>, vector<128x384xbf16>
    %cst_9 = arith.constant dense<0.000000e+00> : vector<8x384xf32>
    %9 = tpu.matmul %7, %8, %cst_9 {dimension_numbers = #tpu.dot_dimension_numbers<[1], [0], [0], [1], [0, 0, 1, 1], [], []>} : vector<8x128xbf16>, vector<128x384xbf16>, vector<8x384xf32> -> vector<8x384xf32>
    %c0_10 = arith.constant 0 : index
    %c0_11 = arith.constant 0 : index
    %10 = vector.load %arg6[%c0_10, %c0_11] : memref<1x384xf32, #tpu.memory_space<vmem>>, vector<1x384xf32>
    %11 = vector.broadcast %10 : vector<1x384xf32> to vector<8x384xf32>
    %12 = arith.addf %9, %11 : vector<8x384xf32>
    %13 = vector.extract_strided_slice %6 {offsets = [0, 0], sizes = [8, 128], strides = [1, 1]} : vector<8x384xf32> to vector<8x128xf32>
    %14 = vector.extract_strided_slice %12 {offsets = [0, 0], sizes = [8, 128], strides = [1, 1]} : vector<8x384xf32> to vector<8x128xf32>
    %15 = arith.addf %13, %14 : vector<8x128xf32>
    %16 = arith.negf %15 : vector<8x128xf32>
    %17 = math.exp %16 : vector<8x128xf32>
    %cst_12 = arith.constant 1.000000e+00 : f32
    %18 = vector.broadcast %cst_12 : f32 to vector<8x128xf32>
    %19 = arith.addf %18, %17 : vector<8x128xf32>
    %20 = arith.divf %18, %19 : vector<8x128xf32>
    %21 = vector.extract_strided_slice %6 {offsets = [0, 128], sizes = [8, 128], strides = [1, 1]} : vector<8x384xf32> to vector<8x128xf32>
    %22 = vector.extract_strided_slice %12 {offsets = [0, 128], sizes = [8, 128], strides = [1, 1]} : vector<8x384xf32> to vector<8x128xf32>
    %23 = arith.addf %21, %22 : vector<8x128xf32>
    %24 = arith.negf %23 : vector<8x128xf32>
    %25 = math.exp %24 : vector<8x128xf32>
    %cst_13 = arith.constant 1.000000e+00 : f32
    %26 = vector.broadcast %cst_13 : f32 to vector<8x128xf32>
    %27 = arith.addf %26, %25 : vector<8x128xf32>
    %28 = arith.divf %26, %27 : vector<8x128xf32>
    %29 = vector.extract_strided_slice %6 {offsets = [0, 256], sizes = [8, 128], strides = [1, 1]} : vector<8x384xf32> to vector<8x128xf32>
    %30 = vector.extract_strided_slice %12 {offsets = [0, 256], sizes = [8, 128], strides = [1, 1]} : vector<8x384xf32> to vector<8x128xf32>
    %31 = arith.mulf %20, %30 : vector<8x128xf32>
    %32 = arith.addf %29, %31 : vector<8x128xf32>
    %33 = math.tanh %32 : vector<8x128xf32>
    %34 = arith.subf %1, %33 : vector<8x128xf32>
    %35 = arith.mulf %28, %34 : vector<8x128xf32>
    %36 = arith.addf %33, %35 : vector<8x128xf32>
    %c0_14 = arith.constant 0 : index
    %c0_15 = arith.constant 0 : index
    %37 = vector.load %arg7[%c0_14, %c0_15] : memref<8x128xf32, #tpu.memory_space<vmem>>, vector<8x128xf32>
    tpu.vector_store %arg7[%c0_14, %c0_15], %36 {strides = array<i32>} : memref<8x128xf32, #tpu.memory_space<vmem>>, vector<8x128xf32>,
    return
  }
  func.func @transform_0(%arg0: i32) -> (i32, i32) {
    %c0_i32 = arith.constant 0 : i32
    %c0_i32_0 = arith.constant 0 : i32
    return %arg0, %c0_i32 : i32, i32
  }
  func.func @transform_1(%arg0: i32) -> (i32, i32) {
    %c0_i32 = arith.constant 0 : i32
    %c0_i32_0 = arith.constant 0 : i32
    return %arg0, %c0_i32 : i32, i32
  }
  func.func @transform_2(%arg0: i32) -> (i32, i32) {
    %c0_i32 = arith.constant 0 : i32
    %c0_i32_0 = arith.constant 0 : i32
    %c0_i32_1 = arith.constant 0 : i32
    return %c0_i32, %c0_i32_0 : i32, i32
  }
  func.func @transform_3(%arg0: i32) -> (i32, i32) {
    %c0_i32 = arith.constant 0 : i32
    %c0_i32_0 = arith.constant 0 : i32
    %c0_i32_1 = arith.constant 0 : i32
    return %c0_i32, %c0_i32_0 : i32, i32
  }
  func.func @transform_4(%arg0: i32) -> (i32, i32) {
    %c0_i32 = arith.constant 0 : i32
    %c0_i32_0 = arith.constant 0 : i32
    %c0_i32_1 = arith.constant 0 : i32
    return %c0_i32, %c0_i32_0 : i32, i32
  }
  func.func @transform_5(%arg0: i32) -> (i32, i32) {
    %c0_i32 = arith.constant 0 : i32
    %c0_i32_0 = arith.constant 0 : i32
    %c0_i32_1 = arith.constant 0 : i32
    return %c0_i32, %c0_i32_0 : i32, i32
  }
  func.func @transform_6(%arg0: i32) -> (i32, i32) {
    %c0_i32 = arith.constant 0 : i32
    %c0_i32_0 = arith.constant 0 : i32
    return %arg0, %c0_i32 : i32, i32
  }
}

</mosaic_0001>

<bundles_post_ra>
// kernel: tpu_custom_call.1
= control target key start
LH: loop header
LB: loop body
LE: loop exit
PB: predicated region body
PF: predicated region fallthrough
CT: control target
= control target key end

     0   :  { %11 = vsyncpa [#allocation3], 0  ;;  %s886_s0 = inlined_call_operand.hbm [shape: bf16[8,8], index: 0, kind: input, shape index: {}]   ;;  %s887_s1 = inlined_call_operand.hbm [shape: f32[8,128], index: 1, kind: input, shape index: {}]   ;;  %s888_s2 = inlined_call_operand.hbm [shape: bf16[8,384], index: 2, kind: input, shape index: {}]   ;;  %s889_s3 = inlined_call_operand.hbm [shape: bf16[128,384], index: 3, kind: input, shape index: {}]   ;;  %s890_s4 = inlined_call_operand.vmem [shape: f32[1,384], index: 4, kind: input, shape index: {}]   ;;  %s891_s5 = inlined_call_operand.vmem [shape: f32[1,384], index: 5, kind: input, shape index: {}]   ;;  %s892_s6 = inlined_call_operand.hbm [shape: f32[8,128], index: 6, kind: output, shape index: {}]  }
   0x1   :  { %12 = vsyncpa [#allocation6], 0 }
   0x2   :  { %13 = vsyncpa [#allocation9], 0 }
   0x3   :  { %14 = vsyncpa [#allocation4], 0  ;;  %s745_s21 = smov [#allocation5]   ;;  %s746_s23 = smov [#allocation2]  }
   0x4   :  { %s31_s22 = sshll.u32 %s745_s21, 4  ;;  %s21_s24 = sshll.u32 %s746_s23, 4  ;;  %s32_s22 = int_to_ptr.vmem [resolvable:$true] %s31_s22  ;;  %s22_s24 = int_to_ptr.vmem [resolvable:$true] %s21_s24 }
   0x5   :  { %s627_s27 = scalar_lea.hbm %s887_s1, 128 }
   0x6   :  { %p628_p0 = scmp.ne.s32.totalorder %s887_s1, %s627_s27  ;;  %p631_p1 = scmp.lt.u32.totalorder %s627_s27, %s887_s1 }
   0x8   :  { %p633_p2 = pnand %p631_p1, %p628_p0 }
   0xa   :  { %636 = shalt.err (!%p633_p2)
}
   0xb   :  { %s637_s8 = scalar_lea.vmem %s32_s22, 128  ;;  %p642_p4 = scmp.lt.s32.totalorder %s32_s22, %s32_s22 }
   0xc   :  { %p638_p3 = scmp.ne.s32.totalorder %s32_s22, %s637_s8  ;;  %p643_p5 = scmp.lt.s32.totalorder %s637_s8, %s637_s8 }
   0xe   :  { %p644_p6 = por %p643_p5, %p642_p4 }
  0x10   :  { %p645_p7 = pnand %p644_p6, %p638_p3 }
  0x12   :  { %648 = shalt.err (!%p645_p7)
}
  0x13   :  { %34 = dma.hbm_to_vmem [thread:$0]  %s887_s1, 128, %s32_s22, [#allocation6]  }
  0x14   :  { %s649_s13 = scalar_lea.hbm %s886_s0, 64 }
  0x15   :  { %p650_p8 = scmp.ne.s32.totalorder %s886_s0, %s649_s13  ;;  %p653_p9 = scmp.lt.u32.totalorder %s649_s13, %s886_s0 }
  0x17   :  { %p655_p10 = pnand %p653_p9, %p650_p8 }
  0x19   :  { %658 = shalt.err (!%p655_p10)
}
  0x1a   :  { %s659_s18 = scalar_lea.vmem %s22_s24, 64  ;;  %p664_p12 = scmp.lt.s32.totalorder %s22_s24, %s22_s24 }
  0x1b   :  { %p660_p11 = scmp.ne.s32.totalorder %s22_s24, %s659_s18  ;;  %p665_p13 = scmp.lt.s32.totalorder %s659_s18, %s659_s18 }
  0x1d   :  { %p666_p0 = por %p665_p13, %p664_p12 }
  0x1f   :  { %p667_p1 = pnand %p666_p0, %p660_p11 }
  0x21   :  { %670 = shalt.err (!%p667_p1)
}
  0x22   :  { %24 = dma.hbm_to_vmem [thread:$0]  %s886_s0, 64, %s22_s24, [#allocation3]  }
  0x23   :  { %s747_s20 = smov [#allocation7]   ;;  %s748_s22 = smov [#allocation8]  }
  0x24   :  { %s41_s21 = sshll.u32 %s747_s20, 4  ;;  %s50_s23 = sshll.u32 %s748_s22, 4  ;;  %s42_s21 = int_to_ptr.vmem [resolvable:$true] %s41_s21  ;;  %s814_s23 = int_to_ptr.vmem [resolvable:$true] %s50_s23 }
  0x25   :  { %s671_s27 = scalar_lea.hbm %s888_s2, 192 }
  0x26   :  { %p672_p2 = scmp.ne.s32.totalorder %s888_s2, %s671_s27  ;;  %p675_p3 = scmp.lt.u32.totalorder %s671_s27, %s888_s2 }
  0x28   :  { %p677_p4 = pnand %p675_p3, %p672_p2 }
  0x2a   :  { %680 = shalt.err (!%p677_p4)
}
  0x2b   :  { %s681_s0 = scalar_lea.vmem %s42_s21, 192  ;;  %p686_p6 = scmp.lt.s32.totalorder %s42_s21, %s42_s21 }
  0x2c   :  { %p682_p5 = scmp.ne.s32.totalorder %s42_s21, %s681_s0  ;;  %p687_p7 = scmp.lt.s32.totalorder %s681_s0, %s681_s0 }
  0x2e   :  { %p688_p8 = por %p687_p7, %p686_p6 }
  0x30   :  { %p689_p9 = pnand %p688_p8, %p682_p5 }
  0x32   :  { %692 = shalt.err (!%p689_p9)
}
  0x33   :  { %44 = dma.hbm_to_vmem [thread:$0]  %s888_s2, 192, %s42_s21, [#allocation6]  }
  0x34   :  { %s693_s11 = scalar_lea.hbm %s889_s3, 3072 }
  0x35   :  { %p694_p10 = scmp.ne.s32.totalorder %s889_s3, %s693_s11  ;;  %p697_p11 = scmp.lt.u32.totalorder %s693_s11, %s889_s3 }
  0x37   :  { %p699_p12 = pnand %p697_p11, %p694_p10 }
  0x39   :  { %702 = shalt.err (!%p699_p12)
}
  0x3a   :  { %s703_s16 = scalar_lea.vmem %s814_s23, 3072  ;;  %p708_p0 = scmp.lt.s32.totalorder %s814_s23, %s814_s23 }
  0x3b   :  { %p704_p13 = scmp.ne.s32.totalorder %s814_s23, %s703_s16  ;;  %p709_p1 = scmp.lt.s32.totalorder %s703_s16, %s703_s16 }
  0x3d   :  { %p710_p2 = por %p709_p1, %p708_p0 }
  0x3f   :  { %p711_p3 = pnand %p710_p2, %p704_p13 }
  0x41   :  { %714 = shalt.err (!%p711_p3)
}
  0x42   :  { %s749_s2 = smov 192   ;;  %s750_s17 = smov 12  }
  0x43   :  { %56 = dma.hbm_to_vmem [thread:$0]  %s889_s3, 3072, %s814_s23, [#allocation9], %s749_s2, %s749_s2, %s750_s17  }
  0x44   :  { %737 = dma.done.wait [#allocation3], 64  }
  0x45   :  { %738 = vsyncadd [#allocation3], 4294967232 }
  0x46   :  { %739 = dma.done.wait [#allocation6], 320  }
  0x47   :  { %740 = vsyncadd [#allocation6], 4294966976 }
  0x48   :  { %741 = dma.done.wait [#allocation9], 3072  }
  0x49   :  { %742 = vsyncadd [#allocation9], 4294964224  ;;  %v751_v0 = vmov 0   ;;  %v752_v1 = vmov 0.0   ;;  %vm753_vm0 = vmmov 0   ;;  %v76_v2 = vld [vmem:[#allocation7] sm:$0xff]  ;;  %v80_v39 = vlaneseq }
  0x4a   :  { %149 = vmatprep.mubr.bf16.mxu0 %v751_v0  ;;  %538 = vmatprep.subr.bf16.mxu1 %v752_v1  ;;  %vm107_vm1 = vcmask 1043456   ;;  %v496_v3 = vcombine.high %v76_v2, %v76_v2  ;;  %v495_v4 = vcombine.low %v76_v2, %v76_v2  ;;  %v586_v5 = vld [vmem:[#allocation8 + $0x4] ss:$12 sps:$4 sm:$0xff]   ;;  %v584_v7 = vld [vmem:[#allocation8] ss:$12 sps:$4 sm:$0xff]   ;;  %vm103_vm2 = vcmask 64512  }
  0x4b   :  { %540 = vmatprep.mubr.msk.bf16.mxu1 %vm753_vm0, %v752_v1  ;;  %v74_v8 = vld [vmem:[#allocation2] sm:$0xf]  ;;  %v599_v10 = vld [vmem:[#allocation7 + $0x8] ss:$0 sps:$4 sm:$0xff]   ;;  %v587_v11 = vld [vmem:[#allocation8 + $0x18] ss:$12 sps:$4 sm:$0xff]  }
  0x4c   :  { %498 = vmatprep.subr.msk.bf16.mxu0 %vm107_vm1, %v496_v3  ;;  %v109_v6 = vsel %vm107_vm1, %v495_v4, 0  ;;  %v589_v9 = vld [vmem:[#allocation8 + $0x1c] ss:$12 sps:$4 sm:$0xff]   ;;  %v592_v12 = vld [vmem:[#allocation8 + $0x34] ss:$12 sps:$4 sm:$0xff]   ;;  %v115_v13 = vsel %vm107_vm1, %v599_v10, 0 }
  0x4d   :  { %118 = vmatpush1.bf16.msra.mxu0 %v109_v6  ;;  %539 = vmatpush3.bf16.msra.mxu1 %v115_v13  ;;  %v606_v14 = vld [vmem:[#allocation8 + $0x8] ss:$12 sps:$4 sm:$0xff]   ;;  %v590_v15 = vld [vmem:[#allocation8 + $0x30] ss:$12 sps:$4 sm:$0xff]   ;;  %v595_v16 = vld [vmem:[#allocation8 + $0x4c] ss:$12 sps:$4 sm:$0xff]  }
  0x4e   :  { %376 = vmatprep.subr.bf16.mxu0 %v586_v5  ;;  %544 = vmatprep.subr.bf16.mxu1 %v752_v1  ;;  %v610_v17 = vld [vmem:[#allocation8 + $0x20] ss:$12 sps:$4 sm:$0xff]   ;;  %v593_v18 = vld [vmem:[#allocation8 + $0x48] ss:$12 sps:$4 sm:$0xff]   ;;  %v598_v19 = vld [vmem:[#allocation8 + $0x64] ss:$12 sps:$4 sm:$0xff]  }
  0x4f   :  { %v611_v20 = vld [vmem:[#allocation8 + $0x38] ss:$12 sps:$4 sm:$0xff]   ;;  %v596_v21 = vld [vmem:[#allocation8 + $0x60] ss:$12 sps:$4 sm:$0xff]   ;;  %v602_v22 = vld [vmem:[#allocation8 + $0x7c] ss:$12 sps:$4 sm:$0xff]  }
  0x50   :  { %499 = vmatmul.mubr.msk.bf16.vlgmr.msra.gmra.mrb[0].mxu0 %vm103_vm2, %v74_v8  ;;  %541 = vmatmul.mubr.msk.bf16.vlgmr.msra.gmra.mrb[0].mxu1 %vm103_vm2, %v74_v8  ;;  %v612_v23 = vld [vmem:[#allocation8 + $0x50] ss:$12 sps:$4 sm:$0xff]   ;;  %v600_v24 = vld [vmem:[#allocation8 + $0x78] ss:$12 sps:$4 sm:$0xff]   ;;  %v605_v25 = vld [vmem:[#allocation8 + $0x94] ss:$12 sps:$4 sm:$0xff]  }
  0x51   :  { %377 = vmatpush1.bf16.msra.mxu0 %v584_v7  ;;  %408 = vmatprep.mubr.bf16.mxu0 %v751_v0  ;;  %v613_v26 = vld [vmem:[#allocation8 + $0x68] ss:$12 sps:$4 sm:$0xff]   ;;  %v603_v27 = vld [vmem:[#allocation8 + $0x90] ss:$12 sps:$4 sm:$0xff]   ;;  %v609_v28 = vld [vmem:[#allocation8 + $0xac] ss:$12 sps:$4 sm:$0xff]  }
  0x52   :  { %378 = vmatprep.subr.bf16.mxu0 %v589_v9  ;;  %545 = vmatpush3.bf16.msra.mxu1 %v606_v14  ;;  %v614_v29 = vld [vmem:[#allocation8 + $0x80] ss:$12 sps:$4 sm:$0xff]   ;;  %v607_v30 = vld [vmem:[#allocation8 + $0xa8] ss:$12 sps:$4 sm:$0xff]   ;;  %v615_v32 = vld [vmem:[#allocation8 + $0x98] ss:$12 sps:$4 sm:$0xff]  }
  0x53   :  { %560 = vmatprep.mubr.msk.bf16.mxu1 %vm753_vm0, %v752_v1  ;;  %546 = vmatprep.subr.bf16.mxu1 %v752_v1  ;;  %v861_v31 = vld [vmem:[#allocation5] sm:$0xff]  ;;  %v81_v40 = vshrl.u32 %v80_v39, 7  ;;  %v231_v42 = vld [vmem:[%s891_s5] sm:$0x7] }
  0x54   :  { %v198_v33 = vpack.c.bf16 %v861_v31, %v861_v31  ;;  %v616_v34 = vld [vmem:[#allocation8 + $0xb0] ss:$12 sps:$4 sm:$0xff]   ;;  %v78_v43 = vld [vmem:[%s890_s4] sm:$0x7]  ;;  %s754_s4 = smov [#allocation10]  }
  0x55   :  { %379 = vmatpush1.bf16.msra.mxu0 %v587_v11  ;;  %v82_v41 = vsub.s32 0, %v81_v40  ;;  %v86_v47 = vsub.s32 1, %v81_v40  ;;  %s484_s5 = sshll.u32 %s754_s4, 4  ;;  %s485_s5 = int_to_ptr.vmem [resolvable:$true] %s484_s5 }
  0x56   :  { %380 = vmatprep.subr.bf16.mxu0 %v592_v12  ;;  %547 = vmatpush3.bf16.msra.mxu1 %v610_v17  ;;  %s715_s22 = scalar_lea.vmem %s485_s5, 128  ;;  %p720_p5 = scmp.lt.s32.totalorder %s485_s5, %s485_s5 }
  0x57   :  { %548 = vmatprep.subr.bf16.mxu1 %v752_v1  ;;  %v83_v44 = vrot.slane %v78_v43, %v82_v41  ;;  %v236_v45 = vrot.slane %v231_v42, %v82_v41  ;;  %v87_v50 = vrot.slane %v78_v43, %v86_v47  ;;  %v240_v51 = vrot.slane %v231_v42, %v86_v47  ;;  %p716_p4 = scmp.ne.s32.totalorder %s485_s5, %s715_s22  ;;  %p721_p6 = scmp.lt.s32.totalorder %s715_s22, %s715_s22 }
  0x59   :  { %381 = vmatpush1.bf16.msra.mxu0 %v590_v15  ;;  %v564_v46 = vadd.f32 %v236_v45, %v83_v44  ;;  %v566_v56 = vadd.f32 %v240_v51, %v87_v50  ;;  %p722_p7 = por %p721_p6, %p720_p5 }
  0x5a   :  { %382 = vmatprep.subr.bf16.mxu0 %v595_v16  ;;  %549 = vmatpush3.bf16.msra.mxu1 %v611_v20 }
  0x5b   :  { %550 = vmatprep.subr.bf16.mxu1 %v752_v1  ;;  %p723_p8 = pnand %p722_p7, %p716_p4 }
  0x5d   :  { %383 = vmatpush1.bf16.msra.mxu0 %v593_v18 }
  0x5e   :  { %384 = vmatprep.subr.bf16.mxu0 %v598_v19  ;;  %551 = vmatpush3.bf16.msra.mxu1 %v612_v23 }
  0x5f   :  { %552 = vmatprep.subr.bf16.mxu1 %v752_v1 }
  0x61   :  { %385 = vmatpush1.bf16.msra.mxu0 %v596_v21 }
  0x62   :  { %386 = vmatprep.subr.bf16.mxu0 %v602_v22  ;;  %553 = vmatpush3.bf16.msra.mxu1 %v613_v26 }
  0x63   :  { %554 = vmatprep.subr.bf16.mxu1 %v752_v1 }
  0x65   :  { %387 = vmatpush1.bf16.msra.mxu0 %v600_v24 }
  0x66   :  { %388 = vmatprep.subr.bf16.mxu0 %v605_v25  ;;  %555 = vmatpush3.bf16.msra.mxu1 %v614_v29 }
  0x67   :  { %556 = vmatprep.subr.bf16.mxu1 %v752_v1 }
  0x69   :  { %389 = vmatpush1.bf16.msra.mxu0 %v603_v27 }
  0x6a   :  { %390 = vmatprep.subr.bf16.mxu0 %v609_v28  ;;  %557 = vmatpush3.bf16.msra.mxu1 %v615_v32 }
  0x6b   :  { %558 = vmatprep.subr.bf16.mxu1 %v752_v1  ;;  %v90_v1 = vsub.s32 2, %v81_v40 }
  0x6d   :  { %391 = vmatpush1.bf16.msra.mxu0 %v607_v30  ;;  %v244_v2 = vrot.slane %v231_v42, %v90_v1  ;;  %v91_v3 = vrot.slane %v78_v43, %v90_v1 }
  0x6e   :  { %559 = vmatpush3.bf16.msra.mxu1 %v616_v34 }
  0x70   :  { %409 = vmatmul.mubr.bf16.vlgmr.msra.gmra.mrb[0].mxu0 %v198_v33 }
  0x71   :  { %561 = vmatmul.mubr.bf16.vlgmr.msra.gmra.mrb[4].mxu1 %v198_v33 }
 0x123   :  { %v192_v35 = vpop.f32.mrb[0].mxu1 }
 0x124   :  { %v542_v36 = vpop.f32.mrb[1].mxu1  ;;  %v193_v7 = vadd.f32 %v192_v35, %v91_v3 }
 0x125   :  { %v195_v37 = vpop.f32.mrb[2].mxu1 }
 0x126   :  { %v543_v38 = vpop.f32.mrb[3].mxu1 }
 0x143   :  { %v410_v48 = vpop.f32.mrb[0].mxu0 }
 0x144   :  { %v565_v49 = vadd.f32 %v564_v46, %v410_v48  ;;  %v412_v52 = vpop.f32.mrb[1].mxu0  ;;  %v451_v57 = vpop.f32.mrb[4].mxu1 }
 0x145   :  { %v414_v53 = vpop.f32.mrb[2].mxu0  ;;  %v562_v58 = vpop.f32.mrb[5].mxu1  ;;  %v567_v60 = vadd.f32 %v566_v56, %v412_v52  ;;  %v452_v4 = vadd.f32 %v451_v57, %v244_v2 }
 0x146   :  { %v525_v54 = vmul.f32 -1.442695, %v565_v49  ;;  %v415_v55 = vpop.f32.mrb[3].mxu0  ;;  %v454_v59 = vpop.f32.mrb[6].mxu1 }
 0x147   :  { %v563_v61 = vpop.f32.mrb[7].mxu1  ;;  %v526_v62 = vmul.f32 -1.442695, %v567_v60 }
 0x148   :  { %617 = vpow2.f32 %v525_v54 }
 0x149   :  { %619 = vpow2.f32 %v526_v62 }
 0x152   :  { %v618_v63 = vpop.eup %617 }
 0x153   :  { %v461_v0 = vadd.f32 1.0, %v618_v63  ;;  %v620_v5 = vpop.eup %619 }
 0x154   :  { %v468_v9 = vadd.f32 1.0, %v620_v5 }
 0x155   :  { %621 = vrcp.f32 %v461_v0 }
 0x15f   :  { %v622_v6 = vpop.eup %621 }
 0x160   :  { %v471_v8 = vmul.f32 %v622_v6, %v452_v4 }
 0x162   :  { %v472_v10 = vadd.f32 %v471_v8, %v193_v7 }
 0x164   :  { %623 = vtanh.f32 %v472_v10 }
 0x165   :  { %625 = vrcp.f32 %v468_v9 }
 0x16e   :  { %v624_v11 = vpop.eup %623 }
 0x16f   :  { %v474_v12 = vsub.f32 %v861_v31, %v624_v11  ;;  %v626_v13 = vpop.eup %625 }
 0x171   :  { %v475_v14 = vmul.f32 %v626_v13, %v474_v12 }
 0x173   :  { %v476_v15 = vadd.f32 %v624_v11, %v475_v14 }
 0x175   :  { %477 = vst [vmem:[#allocation10] sm:$0xff] %v476_v15 }
 0x176   :  { %726 = shalt.err (!%p723_p8)
}
 0x177   :  { %s727_s26 = scalar_lea.hbm %s892_s6, 128 }
 0x178   :  { %p728_p9 = scmp.ne.s32.totalorder %s892_s6, %s727_s26  ;;  %p731_p10 = scmp.lt.u32.totalorder %s727_s26, %s892_s6 }
 0x17a   :  { %p733_p11 = pnand %p731_p10, %p728_p9 }
 0x17c   :  { %736 = shalt.err (!%p733_p11)
}
 0x17d   :  { %487 = dma.vmem_to_hbm [thread:$0]  %s485_s5, 128, %s892_s6, [#allocation4]  }
 0x17e   :  { %743 = dma.done.wait [#allocation4], 128  }
 0x17f   :  { %744 = vsyncadd [#allocation4], 4294967168 }
 0x180   :  { %491 = vsyncpa [#allocation3], 1 }
 0x181   :  { %492 = vsyncpa [#allocation6], 1 }
 0x182   :  { %493 = vsyncpa [#allocation9], 1 }
 0x183   :  { %494 = vsyncpa [#allocation4], 1 }

</bundles_post_ra>
